<compile_context>
chip_gen: v6e
topology: v6e:2x2x1
jax: 0.10.0
libtpu: 0.0.40
codegen_flags: <defaults>
</compile_context>

<pallas_src>
import jax
import jax.numpy as jnp
from jax.experimental import pallas as pl
from jax.experimental.pallas import tpu as pltpu

# Logical MLP dims (match the PyTorch module defaults).
D_IN, H1, H2, H3, D_OUT = 50, 100, 300, 50, 1

# Lane-aligned padded dims (multiples of 128).
D_IN_P, H1_P, H2_P, H3_P, D_OUT_P = 128, 128, 384, 128, 128


def _round_up(n, m):
    return (n + m - 1) // m * m


def mlp_kernel(x_ref,
               w1_ref, b1_ref,
               w2_ref, b2_ref,
               w3_ref, b3_ref,
               w4_ref, b4_ref,
               o_ref):
    # Whole hot path (4 matmuls + bias + ReLU) fused in one kernel body.
    # bf16 MXU operands, f32 accumulation; bias/ReLU kept in f32 on the VPU.
    x = x_ref[...].astype(jnp.bfloat16)
    h = jnp.dot(x, w1_ref[...], preferred_element_type=jnp.float32) + b1_ref[...]
    h = jnp.maximum(h, 0.0)
    h = jnp.dot(h.astype(jnp.bfloat16), w2_ref[...],
                preferred_element_type=jnp.float32) + b2_ref[...]
    h = jnp.maximum(h, 0.0)
    h = jnp.dot(h.astype(jnp.bfloat16), w3_ref[...],
                preferred_element_type=jnp.float32) + b3_ref[...]
    h = jnp.maximum(h, 0.0)
    y = jnp.dot(h.astype(jnp.bfloat16), w4_ref[...],
                preferred_element_type=jnp.float32) + b4_ref[...]
    o_ref[...] = y.astype(o_ref.dtype)


def _pick_batch_tile(b_padded):
    # Large, MXU-friendly tiles. Only force >=2 grid steps (for v7x megacore
    # sharding) when each TensorCore still gets a big tile; otherwise a single
    # grid step avoids per-step pipeline overhead on tiny batches.
    if b_padded >= 512:
        for t in (512, 256, 128, 64, 32, 16, 8):
            if b_padded % t == 0 and b_padded // t >= 2:
                return t
    for t in (512, 256, 128, 64, 32, 16, 8):
        if b_padded % t == 0:
            return t
    return b_padded


@jax.jit
def mlp_forward(x, padded_params):
    B = x.shape[0]
    (w1, b1), (w2, b2), (w3, b3), (w4, b4) = padded_params

    b_pad = _round_up(max(B, 8), 8)
    batch_tile = _pick_batch_tile(b_pad)

    # Zero-pad input: batch to a tile multiple, features to the padded width
    # (extra W1 rows are zero, so the padded columns contribute nothing).
    xp = jnp.pad(x, ((0, b_pad - B), (0, D_IN_P - D_IN)))

    flops = 2 * b_pad * (D_IN_P * H1_P + H1_P * H2_P + H2_P * H3_P + H3_P * D_OUT_P)
    bytes_accessed = (xp.size * 4 + b_pad * D_OUT_P * 4
                      + sum(w.size * 2 + b.size * 4 for (w, b) in padded_params))

    # Constant index_map -> weight/bias tiles stay resident in VMEM across
    # all grid steps (no re-DMA per batch tile).
    full = lambda shape: pl.BlockSpec(shape, lambda i: (0, 0))

    out = pl.pallas_call(
        mlp_kernel,
        out_shape=jax.ShapeDtypeStruct((b_pad, D_OUT_P), jnp.float32),
        grid_spec=pltpu.PrefetchScalarGridSpec(
            num_scalar_prefetch=0,
            grid=(b_pad // batch_tile,),
            in_specs=[
                pl.BlockSpec((batch_tile, D_IN_P), lambda i: (i, 0)),
                full(w1.shape), full(b1.shape),
                full(w2.shape), full(b2.shape),
                full(w3.shape), full(b3.shape),
                full(w4.shape), full(b4.shape),
            ],
            out_specs=pl.BlockSpec((batch_tile, D_OUT_P), lambda i: (i, 0)),
        ),
        compiler_params=pltpu.CompilerParams(
            dimension_semantics=("parallel",)),
        cost_estimate=pl.CostEstimate(flops=flops, transcendentals=0,
                                      bytes_accessed=bytes_accessed),
    )(xp, w1, b1, w2, b2, w3, b3, w4, b4)

    # Lane-dense store inside the kernel; slice away padding outside.
    return out[:B, :D_OUT]


def init_params(key):
    """Deterministic init mimicking PyTorch Linear (uniform +-1/sqrt(fan_in)).

    Logical shapes: weights (in, out), biases (1, out), all f32.  (Transposed
    storage vs nn.Linear's (out, in); y = x @ W + b is semantically identical.)
    """
    dims = [(D_IN, H1), (H1, H2), (H2, H3), (H3, D_OUT)]
    params = []
    for (fan_in, fan_out) in dims:
        key, kw, kb = jax.random.split(key, 3)
        bound = 1.0 / jnp.sqrt(jnp.float32(fan_in))
        w = jax.random.uniform(kw, (fan_in, fan_out), jnp.float32, -bound, bound)
        b = jax.random.uniform(kb, (1, fan_out), jnp.float32, -bound, bound)
        params.append((w, b))
    return params


def pad_params(params):
    """Zero-pad to lane-aligned dims; weights -> bf16 (MXU), biases stay f32."""
    padded_dims = [(D_IN_P, H1_P), (H1_P, H2_P), (H2_P, H3_P), (H3_P, D_OUT_P)]
    padded = []
    for (w, b), (pin, pout) in zip(params, padded_dims):
        fi, fo = w.shape
        wp = jnp.zeros((pin, pout), jnp.bfloat16).at[:fi, :fo].set(
            w.astype(jnp.bfloat16))
        bp = jnp.zeros((1, pout), jnp.float32).at[:, :fo].set(b)
        padded.append((wp, bp))
    return padded


def mlp_reference(x, params):
    h = x
    for i, (w, b) in enumerate(params):
        h = h @ w + b
        if i < len(params) - 1:
            h = jnp.maximum(h, 0.0)
    return h


if __name__ == "__main__":
    key = jax.random.PRNGKey(0)
    kx, kp = jax.random.split(key)

    B = 16  # small batch; single lane-dense grid step
    x = jax.random.normal(kx, (B, D_IN), jnp.float32)
    params = init_params(kp)
    padded_params = pad_params(params)

    y = mlp_forward(x, padded_params)
    y = jax.block_until_ready(y)

    y_ref = mlp_reference(x, params)
    assert y.shape == (B, D_OUT)
    # bf16 MXU operands (f32 accumulation) -> loosened tolerance vs f32 ref.
    assert jnp.allclose(y, y_ref, atol=5e-2, rtol=5e-2), "mismatch vs reference"

    print("KERNEL_OK")
</pallas_src>

<mosaic_0001>
module attributes {stable_mosaic.version = 11 : i64} {
  func.func @mlp_kernel(%arg0: i32, %arg1: memref<16x128xf32, #tpu.memory_space<vmem>>, %arg2: memref<128x128xbf16, #tpu.memory_space<vmem>>, %arg3: memref<1x128xf32, #tpu.memory_space<vmem>>, %arg4: memref<128x384xbf16, #tpu.memory_space<vmem>>, %arg5: memref<1x384xf32, #tpu.memory_space<vmem>>, %arg6: memref<384x128xbf16, #tpu.memory_space<vmem>>, %arg7: memref<1x128xf32, #tpu.memory_space<vmem>>, %arg8: memref<128x128xbf16, #tpu.memory_space<vmem>>, %arg9: memref<1x128xf32, #tpu.memory_space<vmem>>, %arg10: memref<16x128xf32, #tpu.memory_space<vmem>>) attributes {dimension_semantics = [#tpu.dimension_semantics<parallel>], iteration_bounds = array<i64: 1>, scalar_prefetch = 0 : i64, scratch_operands = 0 : i64, tpu.core_type = #tpu.core_type<tc>, window_params = [{transform_indices = @transform_0, window_bounds = array<i64: 16, 128>}, {pipeline_mode = #tpu.pipeline_mode<synchronous>, transform_indices = @transform_1, window_bounds = array<i64: 128, 128>}, {pipeline_mode = #tpu.pipeline_mode<synchronous>, transform_indices = @transform_2, window_bounds = array<i64: 1, 128>}, {pipeline_mode = #tpu.pipeline_mode<synchronous>, transform_indices = @transform_3, window_bounds = array<i64: 128, 384>}, {pipeline_mode = #tpu.pipeline_mode<synchronous>, transform_indices = @transform_4, window_bounds = array<i64: 1, 384>}, {pipeline_mode = #tpu.pipeline_mode<synchronous>, transform_indices = @transform_5, window_bounds = array<i64: 384, 128>}, {pipeline_mode = #tpu.pipeline_mode<synchronous>, transform_indices = @transform_6, window_bounds = array<i64: 1, 128>}, {pipeline_mode = #tpu.pipeline_mode<synchronous>, transform_indices = @transform_7, window_bounds = array<i64: 128, 128>}, {pipeline_mode = #tpu.pipeline_mode<synchronous>, transform_indices = @transform_8, window_bounds = array<i64: 1, 128>}, {transform_indices = @transform_9, window_bounds = array<i64: 16, 128>}]} {
    %c0 = arith.constant 0 : index
    %c0_0 = arith.constant 0 : index
    %0 = vector.load %arg1[%c0, %c0_0] : memref<16x128xf32, #tpu.memory_space<vmem>>, vector<16x128xf32>
    %1 = arith.truncf %0 : vector<16x128xf32> to vector<16x128xbf16>
    %c0_1 = arith.constant 0 : index
    %c0_2 = arith.constant 0 : index
    %2 = vector.load %arg2[%c0_1, %c0_2] : memref<128x128xbf16, #tpu.memory_space<vmem>>, vector<128x128xbf16>
    %cst = arith.constant dense<0.000000e+00> : vector<16x128xf32>
    %3 = tpu.matmul %1, %2, %cst {dimension_numbers = #tpu.dot_dimension_numbers<[1], [0], [0], [1], [0, 0, 1, 1], [], []>} : vector<16x128xbf16>, vector<128x128xbf16>, vector<16x128xf32> -> vector<16x128xf32>
    %c0_3 = arith.constant 0 : index
    %c0_4 = arith.constant 0 : index
    %4 = vector.load %arg3[%c0_3, %c0_4] : memref<1x128xf32, #tpu.memory_space<vmem>>, vector<1x128xf32>
    %5 = vector.broadcast %4 : vector<1x128xf32> to vector<16x128xf32>
    %6 = arith.addf %3, %5 : vector<16x128xf32>
    %cst_5 = arith.constant 0.000000e+00 : f32
    %7 = vector.broadcast %cst_5 : f32 to vector<16x128xf32>
    %8 = arith.maximumf %6, %7 : vector<16x128xf32>
    %9 = arith.truncf %8 : vector<16x128xf32> to vector<16x128xbf16>
    %c0_6 = arith.constant 0 : index
    %c0_7 = arith.constant 0 : index
    %10 = vector.load %arg4[%c0_6, %c0_7] : memref<128x384xbf16, #tpu.memory_space<vmem>>, vector<128x384xbf16>
    %cst_8 = arith.constant dense<0.000000e+00> : vector<16x384xf32>
    %11 = tpu.matmul %9, %10, %cst_8 {dimension_numbers = #tpu.dot_dimension_numbers<[1], [0], [0], [1], [0, 0, 1, 1], [], []>} : vector<16x128xbf16>, vector<128x384xbf16>, vector<16x384xf32> -> vector<16x384xf32>
    %c0_9 = arith.constant 0 : index
    %c0_10 = arith.constant 0 : index
    %12 = vector.load %arg5[%c0_9, %c0_10] : memref<1x384xf32, #tpu.memory_space<vmem>>, vector<1x384xf32>
    %13 = vector.broadcast %12 : vector<1x384xf32> to vector<16x384xf32>
    %14 = arith.addf %11, %13 : vector<16x384xf32>
    %cst_11 = arith.constant 0.000000e+00 : f32
    %15 = vector.broadcast %cst_11 : f32 to vector<16x384xf32>
    %16 = arith.maximumf %14, %15 : vector<16x384xf32>
    %17 = arith.truncf %16 : vector<16x384xf32> to vector<16x384xbf16>
    %c0_12 = arith.constant 0 : index
    %c0_13 = arith.constant 0 : index
    %18 = vector.load %arg6[%c0_12, %c0_13] : memref<384x128xbf16, #tpu.memory_space<vmem>>, vector<384x128xbf16>
    %cst_14 = arith.constant dense<0.000000e+00> : vector<16x128xf32>
    %19 = tpu.matmul %17, %18, %cst_14 {dimension_numbers = #tpu.dot_dimension_numbers<[1], [0], [0], [1], [0, 0, 1, 1], [], []>} : vector<16x384xbf16>, vector<384x128xbf16>, vector<16x128xf32> -> vector<16x128xf32>
    %c0_15 = arith.constant 0 : index
    %c0_16 = arith.constant 0 : index
    %20 = vector.load %arg7[%c0_15, %c0_16] : memref<1x128xf32, #tpu.memory_space<vmem>>, vector<1x128xf32>
    %21 = vector.broadcast %20 : vector<1x128xf32> to vector<16x128xf32>
    %22 = arith.addf %19, %21 : vector<16x128xf32>
    %cst_17 = arith.constant 0.000000e+00 : f32
    %23 = vector.broadcast %cst_17 : f32 to vector<16x128xf32>
    %24 = arith.maximumf %22, %23 : vector<16x128xf32>
    %25 = arith.truncf %24 : vector<16x128xf32> to vector<16x128xbf16>
    %c0_18 = arith.constant 0 : index
    %c0_19 = arith.constant 0 : index
    %26 = vector.load %arg8[%c0_18, %c0_19] : memref<128x128xbf16, #tpu.memory_space<vmem>>, vector<128x128xbf16>
    %cst_20 = arith.constant dense<0.000000e+00> : vector<16x128xf32>
    %27 = tpu.matmul %25, %26, %cst_20 {dimension_numbers = #tpu.dot_dimension_numbers<[1], [0], [0], [1], [0, 0, 1, 1], [], []>} : vector<16x128xbf16>, vector<128x128xbf16>, vector<16x128xf32> -> vector<16x128xf32>
    %c0_21 = arith.constant 0 : index
    %c0_22 = arith.constant 0 : index
    %28 = vector.load %arg9[%c0_21, %c0_22] : memref<1x128xf32, #tpu.memory_space<vmem>>, vector<1x128xf32>
    %29 = vector.broadcast %28 : vector<1x128xf32> to vector<16x128xf32>
    %30 = arith.addf %27, %29 : vector<16x128xf32>
    %c0_23 = arith.constant 0 : index
    %c0_24 = arith.constant 0 : index
    %31 = vector.load %arg10[%c0_23, %c0_24] : memref<16x128xf32, #tpu.memory_space<vmem>>, vector<16x128xf32>
    tpu.vector_store %arg10[%c0_23, %c0_24], %30 {strides = array<i32>} : memref<16x128xf32, #tpu.memory_space<vmem>>, vector<16x128xf32>,
    return
  }
  func.func @transform_0(%arg0: i32) -> (i32, i32) {
    %c0_i32 = arith.constant 0 : i32
    %c0_i32_0 = arith.constant 0 : i32
    return %arg0, %c0_i32 : i32, i32
  }
  func.func @transform_1(%arg0: i32) -> (i32, i32) {
    %c0_i32 = arith.constant 0 : i32
    %c0_i32_0 = arith.constant 0 : i32
    %c0_i32_1 = arith.constant 0 : i32
    return %c0_i32, %c0_i32_0 : i32, i32
  }
  func.func @transform_2(%arg0: i32) -> (i32, i32) {
    %c0_i32 = arith.constant 0 : i32
    %c0_i32_0 = arith.constant 0 : i32
    %c0_i32_1 = arith.constant 0 : i32
    return %c0_i32, %c0_i32_0 : i32, i32
  }
  func.func @transform_3(%arg0: i32) -> (i32, i32) {
    %c0_i32 = arith.constant 0 : i32
    %c0_i32_0 = arith.constant 0 : i32
    %c0_i32_1 = arith.constant 0 : i32
    return %c0_i32, %c0_i32_0 : i32, i32
  }
  func.func @transform_4(%arg0: i32) -> (i32, i32) {
    %c0_i32 = arith.constant 0 : i32
    %c0_i32_0 = arith.constant 0 : i32
    %c0_i32_1 = arith.constant 0 : i32
    return %c0_i32, %c0_i32_0 : i32, i32
  }
  func.func @transform_5(%arg0: i32) -> (i32, i32) {
    %c0_i32 = arith.constant 0 : i32
    %c0_i32_0 = arith.constant 0 : i32
    %c0_i32_1 = arith.constant 0 : i32
    return %c0_i32, %c0_i32_0 : i32, i32
  }
  func.func @transform_6(%arg0: i32) -> (i32, i32) {
    %c0_i32 = arith.constant 0 : i32
    %c0_i32_0 = arith.constant 0 : i32
    %c0_i32_1 = arith.constant 0 : i32
    return %c0_i32, %c0_i32_0 : i32, i32
  }
  func.func @transform_7(%arg0: i32) -> (i32, i32) {
    %c0_i32 = arith.constant 0 : i32
    %c0_i32_0 = arith.constant 0 : i32
    %c0_i32_1 = arith.constant 0 : i32
    return %c0_i32, %c0_i32_0 : i32, i32
  }
  func.func @transform_8(%arg0: i32) -> (i32, i32) {
    %c0_i32 = arith.constant 0 : i32
    %c0_i32_0 = arith.constant 0 : i32
    %c0_i32_1 = arith.constant 0 : i32
    return %c0_i32, %c0_i32_0 : i32, i32
  }
  func.func @transform_9(%arg0: i32) -> (i32, i32) {
    %c0_i32 = arith.constant 0 : i32
    %c0_i32_0 = arith.constant 0 : i32
    return %arg0, %c0_i32 : i32, i32
  }
}

</mosaic_0001>

<bundles_post_ra>
// kernel: mlp_forward.1
= control target key start
LH: loop header
LB: loop body
LE: loop exit
PB: predicated region body
PF: predicated region fallthrough
CT: control target
= control target key end

     0   :  { %14 = vsyncpa [#allocation3], 0  ;;  %s1392_s0 = inlined_call_operand.vmem [shape: f32[16,128], index: 0, kind: input, shape index: {}]   ;;  %s1393_s1 = inlined_call_operand.hbm [shape: bf16[128,128], index: 1, kind: input, shape index: {}]   ;;  %s1394_s2 = inlined_call_operand.vmem [shape: f32[1,128], index: 2, kind: input, shape index: {}]   ;;  %s1395_s3 = inlined_call_operand.hbm [shape: bf16[128,384], index: 3, kind: input, shape index: {}]   ;;  %s1396_s4 = inlined_call_operand.vmem [shape: f32[1,384], index: 4, kind: input, shape index: {}]   ;;  %s1397_s5 = inlined_call_operand.hbm [shape: bf16[384,128], index: 5, kind: input, shape index: {}]   ;;  %s1398_s6 = inlined_call_operand.vmem [shape: f32[1,128], index: 6, kind: input, shape index: {}]   ;;  %s1399_s7 = inlined_call_operand.hbm [shape: bf16[128,128], index: 7, kind: input, shape index: {}]   ;;  %s1400_s8 = inlined_call_operand.vmem [shape: f32[1,128], index: 8, kind: input, shape index: {}]   ;;  %s1401_s9 = inlined_call_operand.vmem [shape: f32[16,128], index: 9, kind: output, shape index: {}]  }
   0x1   :  { %15 = vsyncpa [#allocation5], 0 }
   0x2   :  { %16 = vsyncpa [#allocation8], 0  ;;  %s1255_s30 = smov [#allocation4]  }
   0x3   :  { %s38_s10 = sshll.u32 %s1255_s30, 4  ;;  %s39_s10 = int_to_ptr.vmem [resolvable:$true] %s38_s10 }
   0x4   :  { %s1177_s11 = scalar_lea.vmem %s39_s10, 3072  ;;  %p1182_p1 = scmp.lt.s32.totalorder %s39_s10, %s39_s10 }
   0x5   :  { %p1178_p0 = scmp.ne.s32.totalorder %s39_s10, %s1177_s11  ;;  %p1183_p2 = scmp.lt.s32.totalorder %s1177_s11, %s1177_s11 }
   0x7   :  { %p1184_p3 = por %p1183_p2, %p1182_p1 }
   0x9   :  { %p1185_p4 = pnand %p1184_p3, %p1178_p0 }
   0xb   :  { %1188 = shalt.err (!%p1185_p4)
}
   0xc   :  { %s1256_s12 = smov 192   ;;  %s1257_s13 = smov 12  }
   0xd   :  { %44 = dma.hbm_to_vmem [thread:$0]  %s1395_s3, 3072, %s39_s10, [#allocation5], %s1256_s12, %s1256_s12, %s1257_s13  }
   0xe   :  { %s1258_s16 = smov [#allocation2]  }
   0xf   :  { %s24_s17 = sshll.u32 %s1258_s16, 4  ;;  %s25_s17 = int_to_ptr.vmem [resolvable:$true] %s24_s17 }
  0x10   :  { %s1197_s18 = scalar_lea.vmem %s25_s17, 1024  ;;  %p1202_p6 = scmp.lt.s32.totalorder %s25_s17, %s25_s17 }
  0x11   :  { %p1198_p5 = scmp.ne.s32.totalorder %s25_s17, %s1197_s18  ;;  %p1203_p7 = scmp.lt.s32.totalorder %s1197_s18, %s1197_s18 }
  0x13   :  { %p1204_p8 = por %p1203_p7, %p1202_p6 }
  0x15   :  { %p1205_p9 = pnand %p1204_p8, %p1198_p5 }
  0x17   :  { %1208 = shalt.err (!%p1205_p9)
}
  0x18   :  { %s1259_s19 = smov 64   ;;  %s1260_s20 = smov 4  }
  0x19   :  { %30 = dma.hbm_to_vmem [thread:$0]  %s1393_s1, 1024, %s25_s17, [#allocation3], %s1259_s19, %s1259_s19, %s1260_s20  }
  0x1a   :  { %s1261_s23 = smov [#allocation6]   ;;  %s1262_s25 = smov [#allocation7]  }
  0x1b   :  { %s52_s24 = sshll.u32 %s1261_s23, 4  ;;  %s66_s3 = sshll.u32 %s1262_s25, 4  ;;  %s53_s24 = int_to_ptr.vmem [resolvable:$true] %s52_s24  ;;  %s67_s3 = int_to_ptr.vmem [resolvable:$true] %s66_s3 }
  0x1c   :  { %s1217_s26 = scalar_lea.vmem %s53_s24, 3072  ;;  %p1222_p11 = scmp.lt.s32.totalorder %s53_s24, %s53_s24 }
  0x1d   :  { %p1218_p10 = scmp.ne.s32.totalorder %s53_s24, %s1217_s26  ;;  %p1223_p12 = scmp.lt.s32.totalorder %s1217_s26, %s1217_s26 }
  0x1f   :  { %p1224_p13 = por %p1223_p12, %p1222_p11 }
  0x21   :  { %p1225_p0 = pnand %p1224_p13, %p1218_p10 }
  0x23   :  { %1228 = shalt.err (!%p1225_p0)
}
  0x24   :  { %58 = dma.hbm_to_vmem [thread:$0]  %s1397_s5, 3072, %s53_s24, [#allocation5], %s1259_s19, %s1259_s19, %s1260_s20  }
  0x25   :  { %s1237_s29 = scalar_lea.vmem %s67_s3, 1024  ;;  %p1242_p2 = scmp.lt.s32.totalorder %s67_s3, %s67_s3 }
  0x26   :  { %p1238_p1 = scmp.ne.s32.totalorder %s67_s3, %s1237_s29  ;;  %p1243_p3 = scmp.lt.s32.totalorder %s1237_s29, %s1237_s29 }
  0x28   :  { %p1244_p4 = por %p1243_p3, %p1242_p2 }
  0x2a   :  { %p1245_p5 = pnand %p1244_p4, %p1238_p1 }
  0x2c   :  { %1248 = shalt.err (!%p1245_p5)
}
  0x2d   :  { %72 = dma.hbm_to_vmem [thread:$0]  %s1399_s7, 1024, %s67_s3, [#allocation8], %s1259_s19, %s1259_s19, %s1260_s20  }
  0x2e   :  { %1249 = dma.done.wait [#allocation3], 1024  }
  0x2f   :  { %1250 = vsyncadd [#allocation3], 4294966272 }
  0x30   :  { %1251 = dma.done.wait [#allocation5], 6144  }
  0x31   :  { %1252 = vsyncadd [#allocation5], 4294961152 }
  0x32   :  { %1253 = dma.done.wait [#allocation8], 1024  }
  0x33   :  { %1254 = vsyncadd [#allocation8], 4294966272  ;;  %v1263_v0 = vmov 0.0   ;;  %vm1264_vm0 = vmmov 0   ;;  %v1097_v1 = vld [vmem:[#allocation2 + $0x38] sm:$0xff]   ;;  %v1098_v2 = vld [vmem:[#allocation2 + $0x30] sm:$0xff]  }
  0x34   :  { %1006 = vmatprep.subr.bf16.mxu0 %v1263_v0  ;;  %1022 = vmatprep.mubr.msk.bf16.mxu0 %vm1264_vm0, %v1263_v0  ;;  %v1099_v3 = vld [vmem:[#allocation2 + $0x28] sm:$0xff]   ;;  %v1100_v6 = vld [vmem:[#allocation2 + $0x20] sm:$0xff]   ;;  %v1111_v8 = vld [vmem:[#allocation4 + $0x90] ss:$12 sps:$4 sm:$0xff]   ;;  %v1265_v36 = vmov 0  }
  0x35   :  { %1007 = vmatpush3.bf16.msra.mxu0 %v1097_v1  ;;  %v1105_v4 = vld [vmem:[#allocation4 + $0xac] ss:$12 sps:$4 sm:$0xff]   ;;  %v1107_v5 = vld [vmem:[#allocation4 + $0xa8] ss:$12 sps:$4 sm:$0xff]   ;;  %v1117_v12 = vld [vmem:[#allocation4 + $0x64] ss:$12 sps:$4 sm:$0xff]   ;;  %415 = vmatprep.mubr.bf16.mxu1 %v1265_v36 }
  0x36   :  { %1008 = vmatprep.subr.bf16.mxu0 %v1263_v0  ;;  %383 = vmatprep.subr.bf16.mxu1 %v1105_v4  ;;  %v1109_v7 = vld [vmem:[#allocation4 + $0x94] ss:$12 sps:$4 sm:$0xff]   ;;  %v1101_v9 = vld [vmem:[#allocation2 + $0x18] sm:$0xff]   ;;  %v1103_v15 = vld [vmem:[#allocation2 + $0x8] sm:$0xff]  }
  0x37   :  { %384 = vmatpush1.bf16.msra.mxu1 %v1107_v5  ;;  %v1113_v10 = vld [vmem:[#allocation4 + $0x7c] ss:$12 sps:$4 sm:$0xff]   ;;  %v1115_v11 = vld [vmem:[#allocation4 + $0x78] ss:$12 sps:$4 sm:$0xff]   ;;  %v1102_v13 = vld [vmem:[#allocation2 + $0x10] sm:$0xff]  }
  0x38   :  { %385 = vmatprep.subr.bf16.mxu1 %v1109_v7  ;;  %v1119_v14 = vld [vmem:[#allocation4 + $0x60] ss:$12 sps:$4 sm:$0xff]   ;;  %v1123_v17 = vld [vmem:[#allocation4 + $0x48] ss:$12 sps:$4 sm:$0xff]   ;;  %v1108_v22 = vld [vmem:[#allocation4 + $0xb0] ss:$12 sps:$4 sm:$0xff]  }
  0x39   :  { %1009 = vmatpush3.bf16.msra.mxu0 %v1098_v2  ;;  %v1121_v16 = vld [vmem:[#allocation4 + $0x4c] ss:$12 sps:$4 sm:$0xff]   ;;  %v1125_v18 = vld [vmem:[#allocation4 + $0x34] ss:$12 sps:$4 sm:$0xff]   ;;  %v1124_v27 = vld [vmem:[#allocation4 + $0x50] ss:$12 sps:$4 sm:$0xff]  }
  0x3a   :  { %1010 = vmatprep.subr.bf16.mxu0 %v1263_v0  ;;  %v1104_v19 = vld [vmem:[#allocation2] sm:$0xff]   ;;  %v89_v21 = vld [vmem:[%s1392_s0 + $0x8] sm:$0xff]  ;;  %v1127_v28 = vld [vmem:[#allocation4 + $0x30] ss:$12 sps:$4 sm:$0xff]  }
  0x3b   :  { %386 = vmatpush1.bf16.msra.mxu1 %v1111_v8  ;;  %v88_v20 = vld [vmem:[%s1392_s0] sm:$0xff]  ;;  %v1120_v26 = vld [vmem:[#allocation4 + $0x68] ss:$12 sps:$4 sm:$0xff]   ;;  %v1138_v37 = vld [vmem:[#allocation6 + $0x78] sm:$0xff]   ;;  %v240_v8 = vlaneseq }
  0x3c   :  { %387 = vmatprep.subr.bf16.mxu1 %v1113_v10  ;;  %v90_v23 = vpack.c.bf16 %v89_v21, %v88_v20  ;;  %v1112_v24 = vld [vmem:[#allocation4 + $0x98] ss:$12 sps:$4 sm:$0xff]   ;;  %v1116_v25 = vld [vmem:[#allocation4 + $0x80] ss:$12 sps:$4 sm:$0xff]   ;;  %v1129_v30 = vld [vmem:[#allocation4 + $0x1c] ss:$12 sps:$4 sm:$0xff]  }
  0x3d   :  { %1011 = vmatpush3.bf16.msra.mxu0 %v1099_v3  ;;  %v1128_v29 = vld [vmem:[#allocation4 + $0x38] ss:$12 sps:$4 sm:$0xff]   ;;  %v1132_v32 = vld [vmem:[#allocation4 + $0x20] ss:$12 sps:$4 sm:$0xff]   ;;  %v1136_v35 = vld [vmem:[#allocation4 + $0x8] ss:$12 sps:$4 sm:$0xff]  }
  0x3e   :  { %1012 = vmatprep.subr.bf16.mxu0 %v1263_v0  ;;  %v1131_v31 = vld [vmem:[#allocation4 + $0x18] ss:$12 sps:$4 sm:$0xff]   ;;  %v1135_v34 = vld [vmem:[#allocation4] ss:$12 sps:$4 sm:$0xff]   ;;  %v1141_v50 = vld [vmem:[#allocation6 + $0x70] sm:$0xff]  }
  0x3f   :  { %388 = vmatpush1.bf16.msra.mxu1 %v1115_v11  ;;  %v1133_v33 = vld [vmem:[#allocation4 + $0x4] ss:$12 sps:$4 sm:$0xff]   ;;  %v881_v38 = vld [vmem:[%s1394_s2] ss:$0 sm:$0xff]  ;;  %v1137_v47 = vld [vmem:[#allocation6 + $0xb8] sm:$0xff]  }
  0x40   :  { %389 = vmatprep.subr.bf16.mxu1 %v1117_v12  ;;  %v1139_v48 = vld [vmem:[#allocation6 + $0x38] sm:$0xff]   ;;  %v1140_v51 = vld [vmem:[#allocation6 + $0xb0] sm:$0xff]   ;;  %v1144_v53 = vld [vmem:[#allocation6 + $0x68] sm:$0xff]  }
  0x41   :  { %1013 = vmatpush3.bf16.msra.mxu0 %v1100_v6  ;;  %v1142_v52 = vld [vmem:[#allocation6 + $0x30] sm:$0xff]   ;;  %v1143_v54 = vld [vmem:[#allocation6 + $0xa8] sm:$0xff]   ;;  %v1147_v56 = vld [vmem:[#allocation6 + $0x60] sm:$0xff]  }
  0x42   :  { %1014 = vmatprep.subr.bf16.mxu0 %v1263_v0  ;;  %v1145_v55 = vld [vmem:[#allocation6 + $0x28] sm:$0xff]   ;;  %v1146_v57 = vld [vmem:[#allocation6 + $0xa0] sm:$0xff]   ;;  %v1150_v59 = vld [vmem:[#allocation6 + $0x58] sm:$0xff]  }
  0x43   :  { %390 = vmatpush1.bf16.msra.mxu1 %v1119_v14  ;;  %v1148_v58 = vld [vmem:[#allocation6 + $0x20] sm:$0xff]   ;;  %v1149_v60 = vld [vmem:[#allocation6 + $0x98] sm:$0xff]   ;;  %v1152_v62 = vld [vmem:[#allocation6 + $0x90] sm:$0xff]  }
  0x44   :  { %391 = vmatprep.subr.bf16.mxu1 %v1121_v16  ;;  %v1151_v61 = vld [vmem:[#allocation6 + $0x18] sm:$0xff]   ;;  %v1153_v63 = vld [vmem:[#allocation6 + $0x50] sm:$0xff]   ;;  %v1155_v2 = vld [vmem:[#allocation6 + $0x88] sm:$0xff]  }
  0x45   :  { %1015 = vmatpush3.bf16.msra.mxu0 %v1101_v9  ;;  %v1154_v1 = vld [vmem:[#allocation6 + $0x10] sm:$0xff]   ;;  %v1156_v3 = vld [vmem:[#allocation6 + $0x48] sm:$0xff]   ;;  %v1158_v5 = vld [vmem:[#allocation6 + $0x80] sm:$0xff]   ;;  %v241_v9 = vshrl.u32 %v240_v8, 7 }
  0x46   :  { %1016 = vmatprep.subr.bf16.mxu0 %v1263_v0  ;;  %v1157_v4 = vld [vmem:[#allocation6 + $0x8] sm:$0xff]   ;;  %v1159_v6 = vld [vmem:[#allocation6 + $0x40] sm:$0xff]  }
  0x47   :  { %392 = vmatpush1.bf16.msra.mxu1 %v1123_v17  ;;  %v1160_v7 = vld [vmem:[#allocation6] sm:$0xff]   ;;  %v250_v10 = vsub.s32 2, %v241_v9  ;;  %v246_v12 = vsub.s32 1, %v241_v9 }
  0x48   :  { %393 = vmatprep.subr.bf16.mxu1 %v1125_v18  ;;  %v238_v11 = vld [vmem:[%s1396_s4] sm:$0x7] }
  0x49   :  { %1017 = vmatpush3.bf16.msra.mxu0 %v1102_v13  ;;  %v242_v13 = vsub.s32 0, %v241_v9  ;;  %v251_v14 = vrot.slane %v238_v11, %v250_v10  ;;  %v247_v17 = vrot.slane %v238_v11, %v246_v12 }
  0x4a   :  { %1018 = vmatprep.subr.bf16.mxu0 %v1263_v0 }
  0x4b   :  { %394 = vmatpush1.bf16.msra.mxu1 %v1127_v28  ;;  %v243_v18 = vrot.slane %v238_v11, %v242_v13 }
  0x4c   :  { %395 = vmatprep.subr.bf16.mxu1 %v1129_v30 }
  0x4d   :  { %1019 = vmatpush3.bf16.msra.mxu0 %v1103_v15 }
  0x4e   :  { %1020 = vmatprep.subr.bf16.mxu0 %v1263_v0 }
  0x4f   :  { %396 = vmatpush1.bf16.msra.mxu1 %v1131_v31 }
  0x50   :  { %397 = vmatprep.subr.bf16.mxu1 %v1133_v33 }
  0x51   :  { %1021 = vmatpush3.bf16.msra.mxu0 %v1104_v19 }
  0x52   :  { %1026 = vmatprep.subr.bf16.mxu0 %v1263_v0 }
  0x53   :  { %398 = vmatpush1.bf16.msra.mxu1 %v1135_v34 }
  0x54   :  { %1023 = vmatmul.mubr.bf16.vlgmr.msra.gmra.mxu0 %v90_v23  ;;  %966 = vmatprep.subr.bf16.mxu1 %v1138_v37 }
  0x55   :  { %1027 = vmatpush3.bf16.msra.mxu0 %v1108_v22  ;;  %1042 = vmatprep.mubr.msk.bf16.mxu0 %vm1264_vm0, %v1263_v0 }
  0x56   :  { %1028 = vmatprep.subr.bf16.mxu0 %v1263_v0 }
  0x59   :  { %1029 = vmatpush3.bf16.msra.mxu0 %v1112_v24 }
  0x5a   :  { %1030 = vmatprep.subr.bf16.mxu0 %v1263_v0 }
  0x5d   :  { %1031 = vmatpush3.bf16.msra.mxu0 %v1116_v25 }
  0x5e   :  { %1032 = vmatprep.subr.bf16.mxu0 %v1263_v0 }
  0x61   :  { %1033 = vmatpush3.bf16.msra.mxu0 %v1120_v26 }
  0x62   :  { %1034 = vmatprep.subr.bf16.mxu0 %v1263_v0 }
  0x65   :  { %1035 = vmatpush3.bf16.msra.mxu0 %v1124_v27 }
  0x66   :  { %1036 = vmatprep.subr.bf16.mxu0 %v1263_v0 }
  0x69   :  { %1037 = vmatpush3.bf16.msra.mxu0 %v1128_v29 }
  0x6a   :  { %1038 = vmatprep.subr.bf16.mxu0 %v1263_v0 }
  0x6d   :  { %1039 = vmatpush3.bf16.msra.mxu0 %v1132_v32 }
  0x6e   :  { %1040 = vmatprep.subr.bf16.mxu0 %v1263_v0 }
  0x71   :  { %1041 = vmatpush3.bf16.msra.mxu0 %v1136_v35 }
  0x72   :  { %1046 = vmatprep.subr.bf16.mxu0 %v1263_v0 }
 0x114   :  { %v196_v39 = vpop.f32.mrf.mxu0 }
 0x115   :  { %v197_v41 = vadd.f32 %v881_v38, %v196_v39  ;;  %v1161_v39 = vld [vmem:[#allocation7 + $0x38] sm:$0xff]  }
 0x116   :  { %v1024_v40 = vpop.f32.mrf.mxu0 }
 0x117   :  { %v203_v45 = vmax.f32 %v197_v41, 0.0  ;;  %v1162_v41 = vld [vmem:[#allocation7 + $0x30] sm:$0xff]  }
 0x118   :  { %v199_v42 = vpop.f32.mrf.mxu0 }
 0x119   :  { %v200_v43 = vadd.f32 %v881_v38, %v199_v42  ;;  %v1163_v42 = vld [vmem:[#allocation7 + $0x28] sm:$0xff]  }
 0x11a   :  { %v1025_v44 = vpop.f32.mrf.mxu0 }
 0x11b   :  { %v204_v46 = vmax.f32 %v200_v43, 0.0  ;;  %v1164_v43 = vld [vmem:[#allocation7 + $0x20] sm:$0xff]   ;;  %v1165_v44 = vld [vmem:[#allocation7 + $0x18] sm:$0xff]  }
 0x11d   :  { %v205_v49 = vpack.c.bf16 %v204_v46, %v203_v45  ;;  %v1166_v45 = vld [vmem:[#allocation7 + $0x10] sm:$0xff]   ;;  %v1167_v46 = vld [vmem:[#allocation7 + $0x8] sm:$0xff]  }
 0x11f   :  { %416 = vmatmul.mubr.bf16.vlgmr.msra.gmra.mxu1 %v205_v49  ;;  %1043 = vmatmul.mubr.bf16.vlgmr.msra.gmra.mxu0 %v205_v49 }
 0x120   :  { %1047 = vmatpush3.bf16.msra.mxu0 %v1137_v47  ;;  %967 = vmatpush3.bf16.msra.mxu1 %v1139_v48  ;;  %v1168_v47 = vld [vmem:[#allocation7] sm:$0xff]  }
 0x121   :  { %1048 = vmatprep.subr.bf16.mxu0 %v1263_v0  ;;  %968 = vmatprep.subr.bf16.mxu1 %v1141_v50 }
 0x122   :  { %1062 = vmatprep.mubr.msk.bf16.mxu0 %vm1264_vm0, %v1263_v0 }
 0x124   :  { %1049 = vmatpush3.bf16.msra.mxu0 %v1140_v51  ;;  %969 = vmatpush3.bf16.msra.mxu1 %v1142_v52  ;;  %v914_v52 = vld [vmem:[%s1398_s6] ss:$0 sm:$0xff] }
 0x125   :  { %1050 = vmatprep.subr.bf16.mxu0 %v1263_v0  ;;  %970 = vmatprep.subr.bf16.mxu1 %v1144_v53 }
 0x128   :  { %1051 = vmatpush3.bf16.msra.mxu0 %v1143_v54  ;;  %971 = vmatpush3.bf16.msra.mxu1 %v1145_v55 }
 0x129   :  { %1052 = vmatprep.subr.bf16.mxu0 %v1263_v0  ;;  %972 = vmatprep.subr.bf16.mxu1 %v1147_v56 }
 0x12c   :  { %1053 = vmatpush3.bf16.msra.mxu0 %v1146_v57  ;;  %973 = vmatpush3.bf16.msra.mxu1 %v1148_v58 }
 0x12d   :  { %1054 = vmatprep.subr.bf16.mxu0 %v1263_v0  ;;  %974 = vmatprep.subr.bf16.mxu1 %v1150_v59 }
 0x130   :  { %1055 = vmatpush3.bf16.msra.mxu0 %v1149_v60  ;;  %975 = vmatpush3.bf16.msra.mxu1 %v1151_v61 }
 0x131   :  { %1056 = vmatprep.subr.bf16.mxu0 %v1263_v0  ;;  %976 = vmatprep.subr.bf16.mxu1 %v1153_v63 }
 0x134   :  { %1057 = vmatpush3.bf16.msra.mxu0 %v1152_v62  ;;  %977 = vmatpush3.bf16.msra.mxu1 %v1154_v1 }
 0x135   :  { %1058 = vmatprep.subr.bf16.mxu0 %v1263_v0  ;;  %978 = vmatprep.subr.bf16.mxu1 %v1156_v3 }
 0x138   :  { %1059 = vmatpush3.bf16.msra.mxu0 %v1155_v2  ;;  %979 = vmatpush3.bf16.msra.mxu1 %v1157_v4  ;;  %v939_v2 = vld [vmem:[%s1400_s8] ss:$0 sm:$0xff] }
 0x139   :  { %1060 = vmatprep.subr.bf16.mxu0 %v1263_v0  ;;  %980 = vmatprep.subr.bf16.mxu1 %v1159_v6 }
 0x13c   :  { %1061 = vmatpush3.bf16.msra.mxu0 %v1158_v5  ;;  %981 = vmatpush3.bf16.msra.mxu1 %v1160_v7 }
 0x13d   :  { %1066 = vmatprep.subr.bf16.mxu1 %v1263_v0 }
 0x1df   :  { %v417_v15 = vpop.f32.mrf.mxu1  ;;  %v460_v16 = vpop.f32.mrf.mxu0 }
 0x1e0   :  { %v461_v21 = vadd.f32 %v460_v16, %v251_v14  ;;  %v418_v27 = vadd.f32 %v417_v15, %v243_v18 }
 0x1e1   :  { %v419_v19 = vpop.f32.mrf.mxu1  ;;  %v1044_v20 = vpop.f32.mrf.mxu0 }
 0x1e2   :  { %v420_v24 = vadd.f32 %v419_v19, %v247_v17  ;;  %v469_v30 = vmax.f32 %v461_v21, 0.0  ;;  %v467_v37 = vmax.f32 %v418_v27, 0.0 }
 0x1e3   :  { %v421_v22 = vpop.f32.mrf.mxu1  ;;  %v463_v23 = vpop.f32.mrf.mxu0 }
 0x1e4   :  { %v422_v25 = vadd.f32 %v421_v22, %v243_v18  ;;  %v464_v26 = vadd.f32 %v463_v23, %v251_v14  ;;  %v468_v34 = vmax.f32 %v420_v24, 0.0 }
 0x1e5   :  { %v423_v28 = vpop.f32.mrf.mxu1  ;;  %v1045_v29 = vpop.f32.mrf.mxu0 }
 0x1e6   :  { %v472_v31 = vmax.f32 %v464_v26, 0.0  ;;  %v424_v32 = vadd.f32 %v423_v28, %v247_v17  ;;  %v470_v33 = vmax.f32 %v422_v25, 0.0 }
 0x1e8   :  { %v475_v35 = vpack.c.bf16 %v472_v31, %v469_v30  ;;  %v471_v36 = vmax.f32 %v424_v32, 0.0  ;;  %v473_v40 = vpack.c.bf16 %v470_v33, %v467_v37 }
 0x1ea   :  { %v474_v38 = vpack.c.bf16 %v471_v36, %v468_v34  ;;  %1063 = vmatmul.mubr.bf16.vlgmr.msra.gmra.mxu0 %v475_v35 }
 0x1ec   :  { %707 = vmatprep.mubr.bf16.mxu1 %v474_v38 }
 0x1ed   :  { %708 = vmatmul.mubr.bf16.vlgmr.msra.gmra.mxu1 %v473_v40 }
 0x1ee   :  { %1067 = vmatpush3.bf16.msra.mxu1 %v1161_v39  ;;  %1082 = vmatprep.mubr.msk.bf16.mxu1 %vm1264_vm0, %v1263_v0 }
 0x1ef   :  { %1068 = vmatprep.subr.bf16.mxu1 %v1263_v0 }
 0x1f2   :  { %1069 = vmatpush3.bf16.msra.mxu1 %v1162_v41 }
 0x1f3   :  { %1070 = vmatprep.subr.bf16.mxu1 %v1263_v0 }
 0x1f6   :  { %1071 = vmatpush3.bf16.msra.mxu1 %v1163_v42 }
 0x1f7   :  { %1072 = vmatprep.subr.bf16.mxu1 %v1263_v0 }
 0x1fa   :  { %1073 = vmatpush3.bf16.msra.mxu1 %v1164_v43 }
 0x1fb   :  { %1074 = vmatprep.subr.bf16.mxu1 %v1263_v0 }
 0x1fe   :  { %1075 = vmatpush3.bf16.msra.mxu1 %v1165_v44 }
 0x1ff   :  { %1076 = vmatprep.subr.bf16.mxu1 %v1263_v0 }
 0x202   :  { %1077 = vmatpush3.bf16.msra.mxu1 %v1166_v45 }
 0x203   :  { %1078 = vmatprep.subr.bf16.mxu1 %v1263_v0 }
 0x206   :  { %1079 = vmatpush3.bf16.msra.mxu1 %v1167_v46 }
 0x207   :  { %1080 = vmatprep.subr.bf16.mxu1 %v1263_v0 }
 0x20a   :  { %1081 = vmatpush3.bf16.msra.mxu1 %v1168_v47 }
 0x2aa   :  { %v750_v48 = vpop.f32.mrf.mxu0 }
 0x2ac   :  { %v1064_v49 = vpop.f32.mrf.mxu0 }
 0x2ad   :  { %v982_v50 = vpop.f32.mrf.mxu1 }
 0x2ae   :  { %v753_v51 = vpop.f32.mrf.mxu0 }
 0x2af   :  { %v983_v53 = vpop.f32.mrf.mxu1 }
 0x2b0   :  { %v984_v54 = vadd.f32 %v983_v53, %v982_v50  ;;  %v1065_v55 = vpop.f32.mrf.mxu0 }
 0x2b1   :  { %v985_v56 = vpop.f32.mrf.mxu1 }
 0x2b2   :  { %v710_v57 = vadd.f32 %v984_v54, %v914_v52 }
 0x2b3   :  { %v986_v58 = vpop.f32.mrf.mxu1 }
 0x2b4   :  { %v987_v59 = vadd.f32 %v986_v58, %v985_v56  ;;  %v751_v60 = vadd.f32 %v750_v48, %v710_v57 }
 0x2b6   :  { %v713_v61 = vadd.f32 %v987_v59, %v914_v52  ;;  %v757_v62 = vmax.f32 %v751_v60, 0.0 }
 0x2b8   :  { %v754_v0 = vadd.f32 %v753_v51, %v713_v61 }
 0x2ba   :  { %v758_v63 = vmax.f32 %v754_v0, 0.0 }
 0x2bc   :  { %v759_v1 = vpack.c.bf16 %v758_v63, %v757_v62 }
 0x2be   :  { %1083 = vmatmul.mubr.bf16.vlgmr.msra.gmra.mxu1 %v759_v1 }
 0x37e   :  { %v865_v3 = vpop.f32.mrf.mxu1 }
 0x37f   :  { %v866_v4 = vadd.f32 %v939_v2, %v865_v3 }
 0x380   :  { %v1084_v5 = vpop.f32.mrf.mxu1 }
 0x381   :  { %872 = vst [vmem:[%s1401_s9] sm:$0xff] %v866_v4 }
 0x382   :  { %v868_v6 = vpop.f32.mrf.mxu1 }
 0x383   :  { %v869_v7 = vadd.f32 %v939_v2, %v868_v6 }
 0x384   :  { %v1085_v8 = vpop.f32.mrf.mxu1 }
 0x385   :  { %873 = vst [vmem:[%s1401_s9 + $0x8] sm:$0xff] %v869_v7 }
 0x386   :  { %878 = vsyncpa [#allocation3], 1 }
 0x387   :  { %879 = vsyncpa [#allocation5], 1 }
 0x388   :  { %880 = vsyncpa [#allocation8], 1 }

</bundles_post_ra>
